<compile_context>
chip_gen: v6e
topology: v6e:2x2x1
jax: 0.10.0
libtpu: 0.0.40
codegen_flags: <defaults>
</compile_context>

<pallas_src>
import functools

import jax
import jax.numpy as jnp
from jax import lax
from jax.experimental import pallas as pl
from jax.experimental.pallas import tpu as pltpu


def _squaring_step_kernel(flow2d_ref, flow_ref, grid_ref, out_ref, *, D, H, W, tile_p):
    """One scaling-and-squaring step on one (batch, p-tile):
         out[:, p] = flow[:, p] + trilinear_sample(flow, grid[:, p] + flow[:, p])
       with torch grid_sample semantics (bilinear, border padding, align_corners=True).

    flow2d_ref: (1, 3*D*H, W)  full flow field, row = c*D*H + z*H + y, col = x
    flow_ref  : (1, 3, tile_p) flow at the output positions of this tile (rows x,y,z)
    grid_ref  : (1, 3, tile_p) base normalized sampling grid at those positions
    out_ref   : (1, 3, tile_p)
    """
    f32 = jnp.float32
    bf16 = jnp.bfloat16

    flow2d = flow2d_ref[0]          # (3*D*H, W)
    ft = flow_ref[0]                # (3, tile_p)
    gt = grid_ref[0]                # (3, tile_p)

    # ---- coordinate prologue on the stacked (3, tile_p) block --------------------
    row = lax.broadcasted_iota(jnp.int32, (3, tile_p), 0)
    dim_m1 = jnp.where(row == 0, f32(W - 1),
                       jnp.where(row == 1, f32(H - 1), f32(D - 1)))   # (3, tile_p)
    # align_corners=True unnormalization + border padding (clamp).
    coord = jnp.clip((gt + ft + 1.0) * 0.5 * dim_m1, 0.0, dim_m1)     # (3, tile_p)
    ix = coord[0:1, :]
    iy = coord[1:2, :]
    iz = coord[2:3, :]

    # ---- separable trilinear weights (hat functions), built per axis --------------
    kx = lax.broadcasted_iota(jnp.int32, (W, tile_p), 0).astype(f32)
    ky = lax.broadcasted_iota(jnp.int32, (H, tile_p), 0).astype(f32)
    kz = lax.broadcasted_iota(jnp.int32, (D, tile_p), 0).astype(f32)
    wx = jnp.maximum(0.0, 1.0 - jnp.abs(ix - kx))                     # (W, tile_p)
    wy = jnp.maximum(0.0, 1.0 - jnp.abs(iy - ky))                     # (H, tile_p)
    wz = jnp.maximum(0.0, 1.0 - jnp.abs(iz - kz))                     # (D, tile_p)

    # ---- x contraction on the MXU: native bf16 with manual 3-pass hi/lo split -----
    # (~ lax.Precision.HIGH accuracy, f32 accumulation; replaces the old HIGHEST
    #  6-pass f32 emulation while staying well inside the 1e-2 tolerance.)
    f_hi = flow2d.astype(bf16)
    f_lo = (flow2d - f_hi.astype(f32)).astype(bf16)
    w_hi = wx.astype(bf16)
    w_lo = (wx - w_hi.astype(f32)).astype(bf16)
    a = (jnp.dot(f_hi, w_hi, preferred_element_type=f32)
         + jnp.dot(f_lo, w_hi, preferred_element_type=f32)
         + jnp.dot(f_hi, w_lo, preferred_element_type=f32))           # (3*D*H, tile_p)

    # ---- y and z contractions: small multiply-reduce stages on VPU/XLU ------------
    a = a.reshape(3 * D, H, tile_p)
    b = jnp.sum(a * wy[None, :, :], axis=1)                           # (3*D, tile_p)
    b = b.reshape(3, D, tile_p)
    sampled = jnp.sum(b * wz[None, :, :], axis=1)                     # (3, tile_p)

    out_ref[0] = ft + sampled


def _choose_tile_p(dhw, max_tile=512):
    """Largest lane-dense tile (multiple of 128) <= max_tile that divides DHW."""
    if dhw <= max_tile:
        return dhw
    best = None
    t = 128
    while t <= max_tile:
        if dhw % t == 0:
            best = t
        t += 128
    return best if best is not None else dhw


def diffeomorphic_transform(velocity, sample_grid, time_step=7, tile_p=None):
    """velocity: (N, 3, D, H, W) f32 ; sample_grid: (N, D, H, W, 3) f32 (torch order)."""
    N, C, D, H, W = velocity.shape
    assert C == 3, "3D diffeomorphic transform expects 3 flow channels"
    dhw = D * H * W
    if tile_p is None:
        tile_p = _choose_tile_p(dhw)
    assert dhw % tile_p == 0, f"tile_p={tile_p} must divide D*H*W={dhw}"
    n_tiles = dhw // tile_p

    # channel-major, spatially-flattened layouts; rows are (x, y, z)
    grid_flat = jnp.transpose(sample_grid, (0, 4, 1, 2, 3)).reshape(N, 3, dhw)
    grid_flat = grid_flat.astype(jnp.float32)
    flow = (velocity.astype(jnp.float32) / (2.0 ** time_step)).reshape(N, 3, dhw)

    kernel = functools.partial(_squaring_step_kernel, D=D, H=H, W=W, tile_p=tile_p)
    step = pl.pallas_call(
        kernel,
        out_shape=jax.ShapeDtypeStruct((N, 3, dhw), jnp.float32),
        grid=(N, n_tiles),
        in_specs=[
            # full flow field for this batch element (re-used across p-tiles)
            pl.BlockSpec((1, 3 * D * H, W), lambda n, p: (n, 0, 0)),
            # flow / base grid at this tile's output positions
            pl.BlockSpec((1, 3, tile_p), lambda n, p: (n, 0, p)),
            pl.BlockSpec((1, 3, tile_p), lambda n, p: (n, 0, p)),
        ],
        out_specs=pl.BlockSpec((1, 3, tile_p), lambda n, p: (n, 0, p)),
        compiler_params=pltpu.CompilerParams(
            dimension_semantics=("parallel", "parallel"),
            vmem_limit_bytes=64 * 1024 * 1024,
        ),
    )

    for _ in range(time_step):
        flow2d = flow.reshape(N, 3 * D * H, W)   # same contiguous buffer, new view
        flow = step(flow2d, flow, grid_flat)
    return flow.reshape(N, 3, D, H, W)


# ---------------- pure-JAX reference (for correctness check only) ----------------
def _grid_sample_3d_ref(inp, grid):
    N, C, D, H, W = inp.shape
    ix = jnp.clip((grid[..., 0] + 1.0) * 0.5 * (W - 1), 0.0, W - 1.0)
    iy = jnp.clip((grid[..., 1] + 1.0) * 0.5 * (H - 1), 0.0, H - 1.0)
    iz = jnp.clip((grid[..., 2] + 1.0) * 0.5 * (D - 1), 0.0, D - 1.0)
    x0 = jnp.floor(ix).astype(jnp.int32)
    y0 = jnp.floor(iy).astype(jnp.int32)
    z0 = jnp.floor(iz).astype(jnp.int32)
    tx = ix - x0
    ty = iy - y0
    tz = iz - z0
    x1 = jnp.minimum(x0 + 1, W - 1)
    y1 = jnp.minimum(y0 + 1, H - 1)
    z1 = jnp.minimum(z0 + 1, D - 1)
    flat = inp.reshape(N, C, D * H * W)
    out = jnp.zeros_like(inp)
    for zc, wz in ((z0, 1.0 - tz), (z1, tz)):
        for yc, wy in ((y0, 1.0 - ty), (y1, ty)):
            for xc, wx in ((x0, 1.0 - tx), (x1, tx)):
                idx = (zc * H * W + yc * W + xc).reshape(N, 1, D * H * W)
                gathered = jnp.take_along_axis(
                    flat, jnp.broadcast_to(idx, (N, C, D * H * W)), axis=2
                ).reshape(N, C, D, H, W)
                out = out + (wz * wy * wx)[:, None, ...] * gathered
    return out


def _reference_forward(velocity, sample_grid, time_step):
    flow = velocity / (2.0 ** time_step)
    for _ in range(time_step):
        grid = sample_grid + jnp.transpose(flow, (0, 2, 3, 4, 1))
        flow = flow + _grid_sample_3d_ref(flow, grid)
    return flow


if __name__ == "__main__":
    key = jax.random.PRNGKey(0)
    N, D, H, W = 2, 8, 8, 8
    time_step = 7

    velocity = 0.3 * jax.random.normal(key, (N, 3, D, H, W), jnp.float32)

    # identity sampling grid in normalized coords, channel order (x, y, z)
    zs = jnp.linspace(-1.0, 1.0, D)
    ys = jnp.linspace(-1.0, 1.0, H)
    xs = jnp.linspace(-1.0, 1.0, W)
    gz, gy, gx = jnp.meshgrid(zs, ys, xs, indexing="ij")        # each (D, H, W)
    grid = jnp.stack([gx, gy, gz], axis=-1)                     # (D, H, W, 3)
    sample_grid = jnp.broadcast_to(grid, (N, D, H, W, 3)).astype(jnp.float32)

    # tile_p=128 exercises the multi-tile (batch x p-tile) parallel grid path.
    fn = jax.jit(functools.partial(diffeomorphic_transform,
                                   time_step=time_step, tile_p=128))
    out = jax.block_until_ready(fn(velocity, sample_grid))

    ref = _reference_forward(velocity, sample_grid, time_step)
    assert out.shape == (N, 3, D, H, W)
    err = float(jnp.max(jnp.abs(out - ref)))
    if not jnp.isfinite(jnp.asarray(err)) or err > 1e-2:
        raise AssertionError(f"mismatch vs reference: max abs err = {err}")

    print("KERNEL_OK")
</pallas_src>

<mosaic_0001>
module attributes {stable_mosaic.version = 11 : i64} {
  func.func @_squaring_step_kernel(%arg0: i32, %arg1: i32, %arg2: memref<1x192x8xf32, #tpu.memory_space<vmem>>, %arg3: memref<1x3x128xf32, #tpu.memory_space<vmem>>, %arg4: memref<1x3x128xf32, #tpu.memory_space<vmem>>, %arg5: memref<1x3x128xf32, #tpu.memory_space<vmem>>) attributes {dimension_semantics = [#tpu.dimension_semantics<parallel>, #tpu.dimension_semantics<parallel>], iteration_bounds = array<i64: 2, 4>, scalar_prefetch = 0 : i64, scratch_operands = 0 : i64, tpu.core_type = #tpu.core_type<tc>, window_params = [{transform_indices = @transform_0, window_bounds = array<i64: 1, 192, 8>}, {transform_indices = @transform_1, window_bounds = array<i64: 1, 3, 128>}, {transform_indices = @transform_2, window_bounds = array<i64: 1, 3, 128>}, {transform_indices = @transform_3, window_bounds = array<i64: 1, 3, 128>}]} {
    %c0 = arith.constant 0 : index
    %c0_0 = arith.constant 0 : index
    %c0_1 = arith.constant 0 : index
    %0 = vector.load %arg2[%c0, %c0_0, %c0_1] : memref<1x192x8xf32, #tpu.memory_space<vmem>>, vector<1x192x8xf32>
    %1 = vector.shape_cast %0 : vector<1x192x8xf32> to vector<192x8xf32>
    %c0_2 = arith.constant 0 : index
    %c0_3 = arith.constant 0 : index
    %c0_4 = arith.constant 0 : index
    %2 = vector.load %arg3[%c0_2, %c0_3, %c0_4] : memref<1x3x128xf32, #tpu.memory_space<vmem>>, vector<1x3x128xf32>
    %3 = vector.shape_cast %2 : vector<1x3x128xf32> to vector<3x128xf32>
    %c0_5 = arith.constant 0 : index
    %c0_6 = arith.constant 0 : index
    %c0_7 = arith.constant 0 : index
    %4 = vector.load %arg4[%c0_5, %c0_6, %c0_7] : memref<1x3x128xf32, #tpu.memory_space<vmem>>, vector<1x3x128xf32>
    %5 = vector.shape_cast %4 : vector<1x3x128xf32> to vector<3x128xf32>
    %6 = tpu.iota {dimensions = array<i32: 0>} : vector<3x128xi32>
    %c0_i32 = arith.constant 0 : i32
    %7 = vector.broadcast %c0_i32 : i32 to vector<3x128xi32>
    %8 = arith.cmpi eq, %6, %7 : vector<3x128xi32>
    %c1_i32 = arith.constant 1 : i32
    %9 = vector.broadcast %c1_i32 : i32 to vector<3x128xi32>
    %10 = arith.cmpi eq, %6, %9 : vector<3x128xi32>
    %cst = arith.constant 7.000000e+00 : f32
    %cst_8 = arith.constant 7.000000e+00 : f32
    %11 = vector.broadcast %cst : f32 to vector<3x128xf32>
    %12 = vector.broadcast %cst_8 : f32 to vector<3x128xf32>
    %13 = arith.select %10, %11, %12 : vector<3x128xi1>, vector<3x128xf32>
    %cst_9 = arith.constant 7.000000e+00 : f32
    %14 = vector.broadcast %cst_9 : f32 to vector<3x128xf32>
    %15 = arith.select %8, %14, %13 : vector<3x128xi1>, vector<3x128xf32>
    %16 = arith.addf %5, %3 : vector<3x128xf32>
    %cst_10 = arith.constant 1.000000e+00 : f32
    %17 = vector.broadcast %cst_10 : f32 to vector<3x128xf32>
    %18 = arith.addf %16, %17 : vector<3x128xf32>
    %cst_11 = arith.constant 5.000000e-01 : f32
    %19 = vector.broadcast %cst_11 : f32 to vector<3x128xf32>
    %20 = arith.mulf %18, %19 : vector<3x128xf32>
    %21 = arith.mulf %20, %15 : vector<3x128xf32>
    %cst_12 = arith.constant 0.000000e+00 : f32
    %22 = vector.broadcast %cst_12 : f32 to vector<3x128xf32>
    %23 = arith.maximumf %22, %21 : vector<3x128xf32>
    %24 = arith.minimumf %15, %23 : vector<3x128xf32>
    %25 = vector.extract_strided_slice %24 {offsets = [0, 0], sizes = [1, 128], strides = [1, 1]} : vector<3x128xf32> to vector<1x128xf32>
    %26 = vector.extract_strided_slice %24 {offsets = [1, 0], sizes = [1, 128], strides = [1, 1]} : vector<3x128xf32> to vector<1x128xf32>
    %27 = vector.extract_strided_slice %24 {offsets = [2, 0], sizes = [1, 128], strides = [1, 1]} : vector<3x128xf32> to vector<1x128xf32>
    %28 = tpu.iota {dimensions = array<i32: 0>} : vector<8x128xi32>
    %29 = arith.sitofp %28 : vector<8x128xi32> to vector<8x128xf32>
    %30 = tpu.iota {dimensions = array<i32: 0>} : vector<8x128xi32>
    %31 = arith.sitofp %30 : vector<8x128xi32> to vector<8x128xf32>
    %32 = tpu.iota {dimensions = array<i32: 0>} : vector<8x128xi32>
    %33 = arith.sitofp %32 : vector<8x128xi32> to vector<8x128xf32>
    %34 = vector.broadcast %25 : vector<1x128xf32> to vector<8x128xf32>
    %35 = arith.subf %34, %29 : vector<8x128xf32>
    %36 = math.absf %35 : vector<8x128xf32>
    %cst_13 = arith.constant 1.000000e+00 : f32
    %37 = vector.broadcast %cst_13 : f32 to vector<8x128xf32>
    %38 = arith.subf %37, %36 : vector<8x128xf32>
    %cst_14 = arith.constant 0.000000e+00 : f32
    %39 = vector.broadcast %cst_14 : f32 to vector<8x128xf32>
    %40 = arith.maximumf %39, %38 : vector<8x128xf32>
    %41 = vector.broadcast %26 : vector<1x128xf32> to vector<8x128xf32>
    %42 = arith.subf %41, %31 : vector<8x128xf32>
    %43 = math.absf %42 : vector<8x128xf32>
    %cst_15 = arith.constant 1.000000e+00 : f32
    %44 = vector.broadcast %cst_15 : f32 to vector<8x128xf32>
    %45 = arith.subf %44, %43 : vector<8x128xf32>
    %cst_16 = arith.constant 0.000000e+00 : f32
    %46 = vector.broadcast %cst_16 : f32 to vector<8x128xf32>
    %47 = arith.maximumf %46, %45 : vector<8x128xf32>
    %48 = vector.broadcast %27 : vector<1x128xf32> to vector<8x128xf32>
    %49 = arith.subf %48, %33 : vector<8x128xf32>
    %50 = math.absf %49 : vector<8x128xf32>
    %cst_17 = arith.constant 1.000000e+00 : f32
    %51 = vector.broadcast %cst_17 : f32 to vector<8x128xf32>
    %52 = arith.subf %51, %50 : vector<8x128xf32>
    %cst_18 = arith.constant 0.000000e+00 : f32
    %53 = vector.broadcast %cst_18 : f32 to vector<8x128xf32>
    %54 = arith.maximumf %53, %52 : vector<8x128xf32>
    %55 = arith.truncf %1 : vector<192x8xf32> to vector<192x8xbf16>
    %56 = arith.extf %55 : vector<192x8xbf16> to vector<192x8xf32>
    %57 = arith.subf %1, %56 : vector<192x8xf32>
    %58 = arith.truncf %57 : vector<192x8xf32> to vector<192x8xbf16>
    %59 = arith.truncf %40 : vector<8x128xf32> to vector<8x128xbf16>
    %60 = arith.extf %59 : vector<8x128xbf16> to vector<8x128xf32>
    %61 = arith.subf %40, %60 : vector<8x128xf32>
    %62 = arith.truncf %61 : vector<8x128xf32> to vector<8x128xbf16>
    %cst_19 = arith.constant dense<0.000000e+00> : vector<192x128xf32>
    %63 = tpu.matmul %55, %59, %cst_19 {dimension_numbers = #tpu.dot_dimension_numbers<[1], [0], [0], [1], [0, 0, 1, 1], [], []>} : vector<192x8xbf16>, vector<8x128xbf16>, vector<192x128xf32> -> vector<192x128xf32>
    %cst_20 = arith.constant dense<0.000000e+00> : vector<192x128xf32>
    %64 = tpu.matmul %58, %59, %cst_20 {dimension_numbers = #tpu.dot_dimension_numbers<[1], [0], [0], [1], [0, 0, 1, 1], [], []>} : vector<192x8xbf16>, vector<8x128xbf16>, vector<192x128xf32> -> vector<192x128xf32>
    %65 = arith.addf %63, %64 : vector<192x128xf32>
    %cst_21 = arith.constant dense<0.000000e+00> : vector<192x128xf32>
    %66 = tpu.matmul %55, %62, %cst_21 {dimension_numbers = #tpu.dot_dimension_numbers<[1], [0], [0], [1], [0, 0, 1, 1], [], []>} : vector<192x8xbf16>, vector<8x128xbf16>, vector<192x128xf32> -> vector<192x128xf32>
    %67 = arith.addf %65, %66 : vector<192x128xf32>
    %68 = vector.shape_cast %67 : vector<192x128xf32> to vector<24x8x128xf32>
    %69 = vector.shape_cast %47 : vector<8x128xf32> to vector<1x8x128xf32>
    %70 = vector.broadcast %69 : vector<1x8x128xf32> to vector<24x8x128xf32>
    %71 = arith.mulf %68, %70 : vector<24x8x128xf32>
    %cst_22 = arith.constant dense<0.000000e+00> : vector<24x128xf32>
    %72 = vector.multi_reduction <add>, %71, %cst_22 [1] : vector<24x8x128xf32> to vector<24x128xf32>
    %73 = vector.shape_cast %72 : vector<24x128xf32> to vector<3x8x128xf32>
    %74 = vector.shape_cast %54 : vector<8x128xf32> to vector<1x8x128xf32>
    %75 = vector.broadcast %74 : vector<1x8x128xf32> to vector<3x8x128xf32>
    %76 = arith.mulf %73, %75 : vector<3x8x128xf32>
    %cst_23 = arith.constant dense<0.000000e+00> : vector<3x128xf32>
    %77 = vector.multi_reduction <add>, %76, %cst_23 [1] : vector<3x8x128xf32> to vector<3x128xf32>
    %78 = arith.addf %3, %77 : vector<3x128xf32>
    %c0_24 = arith.constant 0 : index
    %c0_25 = arith.constant 0 : index
    %c0_26 = arith.constant 0 : index
    %79 = vector.load %arg5[%c0_24, %c0_25, %c0_26] : memref<1x3x128xf32, #tpu.memory_space<vmem>>, vector<1x3x128xf32>
    %80 = vector.shape_cast %79 : vector<1x3x128xf32> to vector<3x128xf32>
    %81 = vector.shape_cast %78 : vector<3x128xf32> to vector<1x3x128xf32>
    tpu.vector_store %arg5[%c0_24, %c0_25, %c0_26], %81 {strides = array<i32>} : memref<1x3x128xf32, #tpu.memory_space<vmem>>, vector<1x3x128xf32>,
    return
  }
  func.func @transform_0(%arg0: i32, %arg1: i32) -> (i32, i32, i32) {
    %c0_i32 = arith.constant 0 : i32
    %c0_i32_0 = arith.constant 0 : i32
    %c0_i32_1 = arith.constant 0 : i32
    return %arg0, %c0_i32, %c0_i32_0 : i32, i32, i32
  }
  func.func @transform_1(%arg0: i32, %arg1: i32) -> (i32, i32, i32) {
    %c0_i32 = arith.constant 0 : i32
    %c0_i32_0 = arith.constant 0 : i32
    return %arg0, %c0_i32, %arg1 : i32, i32, i32
  }
  func.func @transform_2(%arg0: i32, %arg1: i32) -> (i32, i32, i32) {
    %c0_i32 = arith.constant 0 : i32
    %c0_i32_0 = arith.constant 0 : i32
    return %arg0, %c0_i32, %arg1 : i32, i32, i32
  }
  func.func @transform_3(%arg0: i32, %arg1: i32) -> (i32, i32, i32) {
    %c0_i32 = arith.constant 0 : i32
    %c0_i32_0 = arith.constant 0 : i32
    return %arg0, %c0_i32, %arg1 : i32, i32, i32
  }
}

</mosaic_0001>

<bundles_post_ra>
// kernel: diffeomorphic_transform.7
= control target key start
LH: loop header
LB: loop body
LE: loop exit
PB: predicated region body
PF: predicated region fallthrough
CT: control target
= control target key end

     0   :  { %s1583_s12 = smov 0   ;;  %s1585_s13 = smov 0   ;;  %s1956_s0 = inlined_call_operand.vmem [shape: f32[2,192,8], index: 0, kind: input, shape index: {}]   ;;  %s1957_s1 = inlined_call_operand.vmem [shape: f32[2,3,512], index: 1, kind: input, shape index: {}]   ;;  %s1958_s2 = inlined_call_operand.vmem [shape: f32[2,3,512], index: 2, kind: input, shape index: {}]   ;;  %s1959_s3 = inlined_call_operand.vmem [shape: f32[2,3,512], index: 3, kind: output, shape index: {}]  }
   0x1   :  { %s1587_s14 = smov 0   ;;  %s1589_s15 = smov 0  }
   0x2   :  { %s1591_s16 = smov 0  }
   0x3 LB: > { %s22_s17 = sadd.s32 1, %s1553_s14  ;;  %s25_s18 = sadd.s32 1, %s1557_s15  ;;  %s1561_s16 = sphi %s1591_s16, %s13_s16   ;;  %s1557_s15 = sphi %s1589_s15, %s1963_s15   ;;  %s1553_s14 = sphi %s1587_s14, %s1962_s14   ;;  %s1549_s13 = sphi %s1585_s13, %s1961_s13   ;;  %s1545_s12 = sphi %s1583_s12, %s1960_s12  }
   0x4   : > { %p23_p0 = scmp.ge.s32.totalorder %s22_s17, 4  ;;  %p1312_p1 = scmp.ge.s32.totalorder %s1561_s16, 1 }
   0x5   : > { %p181_p2 = scmp.lt.s32.totalorder %s1561_s16, 9 }
   0x6   : > { %s1965_s17 = smov (%p23_p0, %s22_s17), 0  ;;  %s1967_s18 = smov (!%p23_p0, %s25_s18), %s1557_s15 }
   0x7   : > { %p182_p3 = pnand %p1312_p1, %p181_p2  ;;  %p27_p4 = scmp.ge.s32.totalorder %s1967_s18, 2 }
   0x8   : > { %p224_p5 = scmp.lt.s32.totalorder (!%p182_p3), %s1549_s13, 1  ;;  %p231_p6 = scmp.lt.s32.totalorder (!%p182_p3), %s1545_s12, 3 }
   0x9   : > { %s1969_s18 = smov (%p27_p4, %s1967_s18), 0  ;;  %185 = sbr.rel (%p182_p3) target bundleno = 377 (0x179), region = 32 }
   0xe   : > { %s1971_s13 = smov (!%p224_p5, %s1549_s13), 1  ;;  %s1973_s12 = smov (!%p231_p6, %s1545_s12), 3  ;;  %v286_v8 = vlaneseq  ;;  %vm389_vm0 = vcmask 64512   ;;  %vm426_vm1 = vcmask 1043456   ;;  %vm1113_vm2 = vcmask 1041409  }
   0xf   : > { %s1481_s19 = smul.u32 192, %s1971_s13  ;;  %s1314_s20 = sshll.u32 %s1971_s13, 2  ;;  %vm1116_vm3 = vcmask 1042434   ;;  %vm1119_vm4 = vcmask 1043459   ;;  %vm1122_vm5 = vcmask 1044484   ;;  %vm1125_vm6 = vcmask 1045509  }
  0x10   : > { %s234_s21 = sadd.s32 %s1314_s20, %s1973_s12  ;;  %v287_v18 = vshrl.u32 %v286_v8, 7  ;;  %vm1128_vm7 = vcmask 1046534   ;;  %vm1131_vm8 = vcmask 1047559  }
  0x11   : > { %s1616_s24 = scalar_lea.vmem %s1956_s0, %s1481_s19  ;;  %s1618_s25 = sshll.u32 %s234_s21, 2 }
  0x12   : > { %s1624_s28 = scalar_lea.vmem %s1957_s1, %s1618_s25  ;;  %s244_s4 = scalar_lea.vmem %s1958_s2, %s1618_s25  ;;  %v254_v0 = vld [vmem:[%s1616_s24] sm:$0xff]  ;;  %v255_v1 = vld [vmem:[%s1616_s24 + $0x8] sm:$0xff]  ;;  %v291_v25 = vsub.s32 0, %v287_v18  ;;  %v299_v26 = vsub.s32 1, %v287_v18  ;;  %v307_v27 = vsub.s32 2, %v287_v18  ;;  %v256_v28 = vld [vmem:[%s1616_s24 + $0x10] sm:$0xff]  ;;  %v1649_v33 = vcvt.s32.f32 %v287_v18 }
  0x13   : > { %v266_v2 = vld [vmem:[%s1616_s24 + $0x60] sm:$0xff]  ;;  %v1634_v5 = vpack.c.bf16 %v255_v1, %v254_v0  ;;  %v267_v6 = vld [vmem:[%s1616_s24 + $0x68] sm:$0xff]  ;;  %v257_v29 = vld [vmem:[%s1616_s24 + $0x18] sm:$0xff]  ;;  %s252_s7 = scalar_lea.vmem %s1959_s3, %s1618_s25 }
  0x14   : > { %v278_v3 = vld [vmem:[%s1624_s28] sm:$0x7]  ;;  %v1637_v9 = vpack.c.bf16 %v267_v6, %v266_v2  ;;  %v268_v30 = vld [vmem:[%s1616_s24 + $0x70] sm:$0xff]  ;;  %v269_v31 = vld [vmem:[%s1616_s24 + $0x78] sm:$0xff]  ;;  %v1653_v36 = vpack.c.bf16 %v257_v29, %v256_v28 }
  0x15   : > { %v279_v4 = vld [vmem:[%s244_s4] sm:$0x7]  ;;  %v325_v10 = vunpack.c.l.bf16 %v1634_v5  ;;  %v326_v11 = vunpack.c.h.bf16 %v1634_v5  ;;  %v259_v35 = vld [vmem:[%s1616_s24 + $0x28] sm:$0xff]  ;;  %v1661_v42 = vpack.c.bf16 %v269_v31, %v268_v30  ;;  %v260_v50 = vld [vmem:[%s1616_s24 + $0x30] sm:$0xff] }
  0x16   : > { %v280_v7 = vadd.f32 %v279_v4, %v278_v3  ;;  %v337_v13 = vunpack.c.l.bf16 %v1637_v9  ;;  %v338_v14 = vunpack.c.h.bf16 %v1637_v9  ;;  %v258_v34 = vld [vmem:[%s1616_s24 + $0x20] sm:$0xff]  ;;  %v271_v38 = vld [vmem:[%s1616_s24 + $0x88] sm:$0xff]  ;;  %v327_v48 = vunpack.c.l.bf16 %v1653_v36  ;;  %v261_v51 = vld [vmem:[%s1616_s24 + $0x38] sm:$0xff] }
  0x17   : > { %v349_v15 = vsub.f32 %v254_v0, %v325_v10  ;;  %v350_v16 = vsub.f32 %v255_v1, %v326_v11  ;;  %v270_v37 = vld [vmem:[%s1616_s24 + $0x80] sm:$0xff]  ;;  %v1663_v43 = vpack.c.bf16 %v259_v35, %v258_v34  ;;  %v328_v49 = vunpack.c.h.bf16 %v1653_v36  ;;  %v272_v55 = vld [vmem:[%s1616_s24 + $0x90] sm:$0xff]  ;;  %v273_v56 = vld [vmem:[%s1616_s24 + $0x98] sm:$0xff] }
  0x18   : > { %v281_v12 = vadd.f32 1.0, %v280_v7  ;;  %v361_v19 = vsub.f32 %v266_v2, %v337_v13  ;;  %v362_v20 = vsub.f32 %v267_v6, %v338_v14  ;;  %v1670_v47 = vpack.c.bf16 %v271_v38, %v270_v37  ;;  %v262_v59 = vld [vmem:[%s1616_s24 + $0x40] sm:$0xff]  ;;  %v263_v60 = vld [vmem:[%s1616_s24 + $0x48] sm:$0xff] }
  0x19   : > { %v373_v21 = vpack.c.bf16 %v350_v16, %v349_v15  ;;  %v339_v53 = vunpack.c.l.bf16 %v1661_v42  ;;  %v340_v54 = vunpack.c.h.bf16 %v1661_v42  ;;  %v329_v57 = vunpack.c.l.bf16 %v1663_v43  ;;  %v274_v1 = vld [vmem:[%s1616_s24 + $0xa0] sm:$0xff]  ;;  %v275_v2 = vld [vmem:[%s1616_s24 + $0xa8] sm:$0xff] }
  0x1a   : > { %v282_v17 = vmul.f32 0.5, %v281_v12  ;;  %v379_v23 = vpack.c.bf16 %v362_v20, %v361_v19  ;;  %v330_v58 = vunpack.c.h.bf16 %v1663_v43  ;;  %v341_v62 = vunpack.c.l.bf16 %v1670_v47 }
  0x1b   : > { %1399 = vmatprep.mubr.msk.bf16.mxu0 %vm389_vm0, %v373_v21  ;;  %v342_v63 = vunpack.c.h.bf16 %v1670_v47  ;;  %v1686_v0 = vpack.c.bf16 %v261_v51, %v260_v50  ;;  %v351_v3 = vsub.f32 %v256_v28, %v327_v48  ;;  %v352_v4 = vsub.f32 %v257_v29, %v328_v49  ;;  %v265_v28 = vld [vmem:[%s1616_s24 + $0x58] sm:$0xff] }
  0x1c   : > { %v283_v22 = vmul.f32 7.0, %v282_v17  ;;  %1411 = vmatprep.mubr.msk.bf16.mxu1 %vm389_vm0, %v379_v23  ;;  %v1690_v6 = vpack.c.bf16 %v273_v56, %v272_v55  ;;  %v363_v8 = vsub.f32 %v268_v30, %v339_v53  ;;  %v364_v10 = vsub.f32 %v269_v31, %v340_v54 }
  0x1d   : > { %v1692_v11 = vpack.c.bf16 %v263_v60, %v262_v59  ;;  %v353_v12 = vsub.f32 %v258_v34, %v329_v57  ;;  %v354_v13 = vsub.f32 %v259_v35, %v330_v58  ;;  %v1694_v14 = vpack.c.bf16 %v275_v2, %v274_v1  ;;  %v276_v34 = vld [vmem:[%s1616_s24 + $0xb0] sm:$0xff]  ;;  %v277_v35 = vld [vmem:[%s1616_s24 + $0xb8] sm:$0xff] }
  0x1e   : > { %v284_v24 = vmax.f32 %v283_v22, 0.0  ;;  %v365_v16 = vsub.f32 %v270_v37, %v341_v62  ;;  %v366_v17 = vsub.f32 %v271_v38, %v342_v63  ;;  %v331_v18 = vunpack.c.l.bf16 %v1686_v0 }
  0x1f   : > { %v374_v19 = vpack.c.bf16 %v352_v4, %v351_v3  ;;  %v332_v20 = vunpack.c.h.bf16 %v1686_v0  ;;  %v343_v21 = vunpack.c.l.bf16 %v1690_v6  ;;  %v344_v22 = vunpack.c.h.bf16 %v1690_v6 }
  0x20   : > { %v285_v32 = vmin.f32 %v284_v24, 7.0  ;;  %v380_v24 = vpack.c.bf16 %v364_v10, %v363_v8  ;;  %v375_v29 = vpack.c.bf16 %v354_v13, %v353_v12  ;;  %v334_v30 = vunpack.c.h.bf16 %v1692_v11 }
  0x21   : > { %v345_v31 = vunpack.c.l.bf16 %v1694_v14  ;;  %v381_v38 = vpack.c.bf16 %v366_v17, %v365_v16  ;;  %v367_v48 = vsub.f32 %v272_v55, %v343_v21  ;;  %v368_v49 = vsub.f32 %v273_v56, %v344_v22 }
  0x22   : > { %v292_v39 = vrot.slane %v285_v32, %v291_v25  ;;  %v1657_v40 = vrot.slane %v285_v32, %v299_v26  ;;  %v1659_v41 = vrot.slane %v285_v32, %v307_v27  ;;  %v333_v26 = vunpack.c.l.bf16 %v1692_v11  ;;  %v264_v27 = vld [vmem:[%s1616_s24 + $0x50] sm:$0xff] }
  0x23   : > { %v346_v32 = vunpack.c.h.bf16 %v1694_v14  ;;  %v324_v57 = vpack.c.bf16 %v277_v35, %v276_v34  ;;  %v358_v58 = vsub.f32 %v263_v60, %v334_v30  ;;  %v382_v56 = vpack.c.bf16 %v368_v49, %v367_v48 }
  0x24   : > { %v293_v44 = vsub.f32 %v292_v39, %v1649_v33  ;;  %v301_v45 = vsub.f32 %v1657_v40, %v1649_v33  ;;  %v309_v46 = vsub.f32 %v1659_v41, %v1649_v33  ;;  %v355_v39 = vsub.f32 %v260_v50, %v331_v18 }
  0x25   : > { %v357_v54 = vsub.f32 %v262_v59, %v333_v26  ;;  %v370_v62 = vsub.f32 %v275_v2, %v346_v32  ;;  %v347_v3 = vunpack.c.l.bf16 %v324_v57  ;;  %v348_v59 = vunpack.c.h.bf16 %v324_v57 }
  0x26   : > { %v294_v52 = vand.u32 2147483647, %v293_v44  ;;  %v356_v44 = vsub.f32 %v261_v51, %v332_v20  ;;  %v302_v22 = vand.u32 2147483647, %v301_v45 }
  0x27   : > { %v377_v4 = vpack.c.bf16 %v358_v58, %v357_v54  ;;  %v372_v2 = vsub.f32 %v277_v35, %v348_v59 }
  0x28   : > { %v295_v61 = vsub.f32 1.0, %v294_v52  ;;  %v318_v52 = vpack.c.bf16 %v265_v28, %v264_v27  ;;  %v376_v51 = vpack.c.bf16 %v356_v44, %v355_v39 }
  0x2a   : > { %v296_v7 = vmax.f32 %v295_v61, 0.0  ;;  %v369_v61 = vsub.f32 %v274_v1, %v345_v31  ;;  %v335_v55 = vunpack.c.l.bf16 %v318_v52  ;;  %v336_v63 = vunpack.c.h.bf16 %v318_v52 }
  0x2b   : > { %v371_v1 = vsub.f32 %v276_v34, %v347_v3 }
  0x2c   : > { %v385_v15 = vpack.c.bf16 %v296_v7, %v296_v7  ;;  %v359_v8 = vsub.f32 %v264_v27, %v335_v55  ;;  %v360_v60 = vsub.f32 %v265_v28, %v336_v63  ;;  %v303_v28 = vsub.f32 1.0, %v302_v22 }
  0x2d   : > { %v384_v12 = vpack.c.bf16 %v372_v2, %v371_v1 }
  0x2e   : > { %1477 = vmatprep.subr.msk.bf16.mxu0 %vm426_vm1, %v385_v15  ;;  %1478 = vmatprep.subr.msk.bf16.mxu1 %vm426_vm1, %v385_v15  ;;  %v428_v23 = vsel %vm426_vm1, %v385_v15, 0  ;;  %v386_v25 = vunpack.c.l.bf16 %v385_v15  ;;  %v378_v10 = vpack.c.bf16 %v360_v60, %v359_v8  ;;  %v1810_v32 = vmax.f32 %v303_v28, 0.0 }
  0x2f   : > { %1398 = vmatpush3.bf16.msra.mxu0 %v428_v23  ;;  %1476 = vmatpush3.bf16.msra.mxu1 %v428_v23 }
  0x30   : > { %1479 = vmatprep.subr.msk.bf16.mxu1 %vm426_vm1, %v385_v15  ;;  %v387_v37 = vsub.f32 %v296_v7, %v386_v25  ;;  %v383_v7 = vpack.c.bf16 %v370_v62, %v369_v61  ;;  %v310_v25 = vand.u32 2147483647, %v309_v46 }
  0x32   : > { %1400 = vmatmul.mubr.msk.bf16.vlgmr.msra.gmra.mxu0 %vm389_vm0, %v374_v19  ;;  %1412 = vmatmul.mubr.msk.bf16.vlgmr.msra.gmra.mxu1 %vm389_vm0, %v380_v24  ;;  %v388_v53 = vpack.c.bf16 %v387_v37, %v387_v37  ;;  %v311_v31 = vsub.f32 1.0, %v310_v25 }
  0x33   : > { %1424 = vmatpush3.bf16.msra.mxu1 %v428_v23  ;;  %1403 = vmatprep.mubr.msk.bf16.mxu0 %vm389_vm0, %v375_v29 }
  0x34   : > { %1480 = vmatprep.subr.msk.bf16.mxu0 %vm426_vm1, %v388_v53  ;;  %v725_v50 = vsel %vm426_vm1, %v388_v53, 0  ;;  %1415 = vmatprep.mubr.msk.bf16.mxu1 %vm389_vm0, %v381_v38  ;;  %v1812_v41 = vmax.f32 %v311_v31, 0.0 }
  0x35   : > { %1450 = vmatpush3.bf16.msra.mxu0 %v725_v50 }
  0x36   : > { %v1817_v62 = vrot.slane %v1812_v41, 2  ;;  %v1821_v59 = vrot.slane %v1812_v41, 3  ;;  %v1827_v8 = vrot.slane %v1812_v41, 6  ;;  %v1834_v28 = vrot.slane %v1812_v41, 7 }
  0x3a   : > { %1404 = vmatmul.mubr.msk.bf16.gmra.mxu0 %vm389_vm0, %v376_v51  ;;  %1416 = vmatmul.mubr.msk.bf16.gmra.mxu1 %vm389_vm0, %v382_v56 }
  0x3b   : > { %1407 = vmatprep.mubr.msk.bf16.mxu0 %vm389_vm0, %v377_v4  ;;  %1419 = vmatprep.mubr.msk.bf16.mxu1 %vm389_vm0, %v383_v7  ;;  %v1824_v4 = vrot.slane %v1812_v41, 1 }
  0x42   : > { %1408 = vmatmul.mubr.msk.bf16.gmra.mxu0 %vm389_vm0, %v378_v10  ;;  %1420 = vmatmul.mubr.msk.bf16.gmra.mxu1 %vm389_vm0, %v384_v12 }
  0x43   : > { %1425 = vmatprep.mubr.msk.bf16.mxu1 %vm389_vm0, %v1634_v5  ;;  %1451 = vmatprep.mubr.msk.bf16.mxu0 %vm389_vm0, %v1634_v5 }
  0x4a   : > { %1426 = vmatmul.mubr.msk.bf16.vlgmr.msra.gmra.mxu1 %vm389_vm0, %v1653_v36  ;;  %1452 = vmatmul.mubr.msk.bf16.vlgmr.msra.gmra.mxu0 %vm389_vm0, %v1653_v36 }
  0x4b   : > { %1429 = vmatprep.mubr.msk.bf16.mxu1 %vm389_vm0, %v1663_v43  ;;  %1455 = vmatprep.mubr.msk.bf16.mxu0 %vm389_vm0, %v1663_v43 }
  0x52   : > { %1430 = vmatmul.mubr.msk.bf16.gmra.mxu1 %vm389_vm0, %v1686_v0  ;;  %1456 = vmatmul.mubr.msk.bf16.gmra.mxu0 %vm389_vm0, %v1686_v0 }
  0x53   : > { %1433 = vmatprep.mubr.msk.bf16.mxu1 %vm389_vm0, %v1692_v11  ;;  %1459 = vmatprep.mubr.msk.bf16.mxu0 %vm389_vm0, %v1692_v11 }
  0x5a   : > { %1434 = vmatmul.mubr.msk.bf16.gmra.mxu1 %vm389_vm0, %v318_v52  ;;  %1460 = vmatmul.mubr.msk.bf16.gmra.mxu0 %vm389_vm0, %v318_v52 }
  0x5b   : > { %1437 = vmatprep.mubr.msk.bf16.mxu1 %vm389_vm0, %v1637_v9  ;;  %1463 = vmatprep.mubr.msk.bf16.mxu0 %vm389_vm0, %v1637_v9 }
  0x62   : > { %1438 = vmatmul.mubr.msk.bf16.gmra.mxu1 %vm389_vm0, %v1661_v42  ;;  %1464 = vmatmul.mubr.msk.bf16.gmra.mxu0 %vm389_vm0, %v1661_v42 }
  0x63   : > { %1441 = vmatprep.mubr.msk.bf16.mxu1 %vm389_vm0, %v1670_v47  ;;  %1467 = vmatprep.mubr.msk.bf16.mxu0 %vm389_vm0, %v1670_v47 }
  0x6a   : > { %1442 = vmatmul.mubr.msk.bf16.gmra.mxu1 %vm389_vm0, %v1690_v6  ;;  %1468 = vmatmul.mubr.msk.bf16.gmra.mxu0 %vm389_vm0, %v1690_v6 }
  0x6b   : > { %1445 = vmatprep.mubr.msk.bf16.mxu1 %vm389_vm0, %v1694_v14  ;;  %1471 = vmatprep.mubr.msk.bf16.mxu0 %vm389_vm0, %v1694_v14 }
  0x72   : > { %1446 = vmatmul.mubr.msk.bf16.gmra.mxu1 %vm389_vm0, %v324_v57  ;;  %1472 = vmatmul.mubr.msk.bf16.gmra.mxu0 %vm389_vm0, %v324_v57 }
  0xf2   : > { %v1401_v5 = vpop.f32.mrf.mxu0  ;;  %v1768_v9 = vpop.f32.mrf.mxu1 }
  0xf4   : > { %v464_v36 = vpop.f32.mrf.mxu0  ;;  %v1770_v42 = vpop.f32.mrf.mxu1 }
  0xf6   : > { %v1402_v43 = vpop.f32.mrf.mxu0  ;;  %v1772_v47 = vpop.f32.mrf.mxu1 }
  0xf8   : > { %v467_v0 = vpop.f32.mrf.mxu0  ;;  %v1774_v6 = vpop.f32.mrf.mxu1 }
  0xfa   : > { %v1405_v11 = vpop.f32.mrf.mxu0  ;;  %v1776_v13 = vpop.f32.mrf.mxu1 }
  0xfc   : > { %v480_v14 = vpop.f32.mrf.mxu0  ;;  %v1778_v15 = vpop.f32.mrf.mxu1 }
  0xfe   : > { %v1780_v16 = vpop.f32.mrf.mxu0  ;;  %v1782_v17 = vpop.f32.mrf.mxu1 }
 0x100   : > { %v1784_v18 = vpop.f32.mrf.mxu0  ;;  %v1786_v19 = vpop.f32.mrf.mxu1 }
 0x102   : > { %v1788_v20 = vpop.f32.mrf.mxu0  ;;  %v1790_v21 = vpop.f32.mrf.mxu1 }
 0x104   : > { %v1795_v23 = vpop.f32.mrf.mxu0  ;;  %v1797_v24 = vpop.f32.mrf.mxu1 }
 0x106   : > { %v1802_v26 = vpop.f32.mrf.mxu0  ;;  %v1804_v27 = vpop.f32.mrf.mxu1 }
 0x108   : > { %v1806_v29 = vpop.f32.mrf.mxu0  ;;  %v1808_v30 = vpop.f32.mrf.mxu1 }
 0x10a   : > { %v1427_v40 = vpop.f32.mrf.mxu1  ;;  %v1453_v45 = vpop.f32.mrf.mxu0 }
 0x10b   : > { %v638_v34 = vadd.f32 %v1427_v40, %v1401_v5 }
 0x10c   : > { %v629_v35 = vpop.f32.mrf.mxu1  ;;  %v761_v37 = vpop.f32.mrf.mxu0 }
 0x10d   : > { %v858_v38 = vadd.f32 %v1453_v45, %v638_v34  ;;  %v630_v33 = vadd.f32 %v629_v35, %v464_v36 }
 0x10e   : > { %v1428_v46 = vpop.f32.mrf.mxu1  ;;  %v1454_v39 = vpop.f32.mrf.mxu0 }
 0x10f   : > { %v882_v44 = vmul.f32 %v858_v38, %v1810_v32  ;;  %v856_v48 = vadd.f32 %v761_v37, %v630_v33  ;;  %v641_v49 = vadd.f32 %v1428_v46, %v1402_v43 }
 0x110   : > { %v632_v52 = vpop.f32.mrf.mxu1  ;;  %v764_v53 = vpop.f32.mrf.mxu0 }
 0x111   : > { %v916_v54 = vrot.slane %v882_v44, 4  ;;  %v880_v57 = vmul.f32 %v856_v48, %v1810_v32  ;;  %v859_v58 = vadd.f32 %v1454_v39, %v641_v49  ;;  %v633_v61 = vadd.f32 %v632_v52, %v467_v0 }
 0x112   : > { %v1431_v50 = vpop.f32.mrf.mxu1  ;;  %v1457_v51 = vpop.f32.mrf.mxu0  ;;  %v1831_v0 = vrot.slane %v1812_v41, 4 }
 0x113   : > { %v917_v55 = vadd.f32 %v916_v54, %v882_v44  ;;  %v904_v56 = vrot.slane %v880_v57, 4  ;;  %v883_v63 = vmul.f32 %v859_v58, %v1810_v32  ;;  %v857_v3 = vadd.f32 %v764_v53, %v633_v61 }
 0x114   : > { %v654_v7 = vadd.f32 %v1431_v50, %v1405_v11  ;;  %v645_v60 = vpop.f32.mrf.mxu1  ;;  %v777_v1 = vpop.f32.mrf.mxu0 }
 0x115   : > { %v918_v2 = vrot.slane %v917_v55, 2  ;;  %v905_v10 = vadd.f32 %v904_v56, %v880_v57  ;;  %v922_v12 = vrot.slane %v883_v63, 4  ;;  %v881_v5 = vmul.f32 %v857_v3, %v1810_v32 }
 0x116   : > { %v862_v36 = vadd.f32 %v1457_v51, %v654_v7  ;;  %v646_v43 = vadd.f32 %v645_v60, %v480_v14  ;;  %v1432_v22 = vpop.f32.mrf.mxu1  ;;  %v1458_v25 = vpop.f32.mrf.mxu0  ;;  %v1839_v14 = vrot.slane %v1812_v41, 5 }
 0x117   : > { %v919_v11 = vadd.f32 %v918_v2, %v917_v55  ;;  %v906_v31 = vrot.slane %v905_v10, 2  ;;  %v923_v40 = vadd.f32 %v922_v12, %v883_v63  ;;  %v910_v45 = vrot.slane %v881_v5, 4 }
 0x118   : > { %v886_v34 = vmul.f32 %v862_v36, %v1810_v32  ;;  %v860_v35 = vadd.f32 %v777_v1, %v646_v43  ;;  %v657_v37 = vadd.f32 %v1432_v22, %v1780_v16  ;;  %v648_v38 = vpop.f32.mrf.mxu1  ;;  %v780_v33 = vpop.f32.mrf.mxu0 }
 0x119   : > { %v920_v46 = vrot.slane %v919_v11, 1  ;;  %v907_v39 = vadd.f32 %v906_v31, %v905_v10  ;;  %v924_v44 = vrot.slane %v923_v40, 2  ;;  %v911_v48 = vadd.f32 %v910_v45, %v881_v5 }
 0x11a   : > { %v940_v49 = vrot.slane %v886_v34, 4  ;;  %v884_v52 = vmul.f32 %v860_v35, %v1810_v32  ;;  %v863_v53 = vadd.f32 %v1458_v25, %v657_v37  ;;  %v649_v54 = vadd.f32 %v648_v38, %v1784_v18  ;;  %v1435_v57 = vpop.f32.mrf.mxu1  ;;  %v1461_v58 = vpop.f32.mrf.mxu0 }
 0x11b   : > { %v921_v61 = vadd.f32 %v920_v46, %v919_v11  ;;  %v908_v50 = vrot.slane %v907_v39, 1  ;;  %v925_v16 = vadd.f32 %v924_v44, %v923_v40  ;;  %v912_v51 = vrot.slane %v911_v48, 2 }
 0x11c   : > { %v941_v55 = vadd.f32 %v940_v49, %v886_v34  ;;  %v928_v56 = vrot.slane %v884_v52, 4  ;;  %v887_v63 = vmul.f32 %v863_v53, %v1810_v32  ;;  %v861_v3 = vadd.f32 %v780_v33, %v649_v54  ;;  %v661_v7 = vpop.f32.mrf.mxu1  ;;  %v793_v60 = vpop.f32.mrf.mxu0 }
 0x11d   : > { %v1066_v1 = vmul.f32 %v1817_v62, %v921_v61  ;;  %v909_v2 = vadd.f32 %v908_v50, %v907_v39  ;;  %v926_v10 = vrot.slane %v925_v16, 1  ;;  %v913_v12 = vadd.f32 %v912_v51, %v911_v48 }
 0x11e   : > { %v942_v18 = vrot.slane %v941_v55, 2  ;;  %v929_v5 = vadd.f32 %v928_v56, %v884_v52  ;;  %v946_v36 = vrot.slane %v887_v63, 4  ;;  %v885_v43 = vmul.f32 %v861_v3, %v1810_v32  ;;  %v1436_v22 = vpop.f32.mrf.mxu1  ;;  %v1462_v25 = vpop.f32.mrf.mxu0 }
 0x11f   : > { %v1115_v11 = vrot.slane %v1066_v1, 6  ;;  %v1064_v31 = vmul.f32 %v909_v2, %v1812_v41  ;;  %v927_v40 = vadd.f32 %v926_v10, %v925_v16  ;;  %v914_v45 = vrot.slane %v913_v12, 1 }
 0x120   : > { %v943_v34 = vadd.f32 %v942_v18, %v941_v55  ;;  %v930_v35 = vrot.slane %v929_v5, 2  ;;  %v947_v37 = vadd.f32 %v946_v36, %v887_v63  ;;  %v934_v38 = vrot.slane %v885_v43, 4  ;;  %v664_v33 = vpop.f32.mrf.mxu1  ;;  %v796_v46 = vpop.f32.mrf.mxu0 }
 0x121   : > { %v1067_v39 = vmul.f32 %v1821_v59, %v927_v40  ;;  %v915_v44 = vadd.f32 %v914_v45, %v913_v12  ;;  %v670_v48 = vadd.f32 %v1435_v57, %v1788_v20  ;;  %v662_v49 = vadd.f32 %v661_v7, %v1795_v23 }
 0x122   : > { %v944_v52 = vrot.slane %v943_v34, 1  ;;  %v931_v53 = vadd.f32 %v930_v35, %v929_v5  ;;  %v948_v54 = vrot.slane %v947_v37, 2  ;;  %v935_v61 = vadd.f32 %v934_v38, %v885_v43  ;;  %v1439_v50 = vpop.f32.mrf.mxu1  ;;  %v1465_v16 = vpop.f32.mrf.mxu0 }
 0x123   : > { %v1118_v51 = vrot.slane %v1067_v39, 5  ;;  %v1065_v55 = vmul.f32 %v1824_v4, %v915_v44  ;;  %v866_v56 = vadd.f32 %v1461_v58, %v670_v48  ;;  %v864_v63 = vadd.f32 %v793_v60, %v662_v49 }
 0x124   : > { %v945_v3 = vadd.f32 %v944_v52, %v943_v34  ;;  %v932_v1 = vrot.slane %v931_v53, 1  ;;  %v949_v2 = vadd.f32 %v948_v54, %v947_v37  ;;  %v936_v10 = vrot.slane %v935_v61, 2  ;;  %v677_v12 = vpop.f32.mrf.mxu1  ;;  %v809_v18 = vpop.f32.mrf.mxu0 }
 0x125   : > { %v1112_v20 = vrot.slane %v1065_v55, 7  ;;  %v890_v23 = vmul.f32 %v866_v56, %v1810_v32  ;;  %v888_v57 = vmul.f32 %v864_v63, %v1810_v32  ;;  %v673_v7 = vadd.f32 %v1436_v22, %v1802_v26 }
 0x126   : > { %v1070_v5 = vmul.f32 %v1827_v8, %v945_v3  ;;  %v933_v36 = vadd.f32 %v932_v1, %v931_v53  ;;  %v950_v43 = vrot.slane %v949_v2, 1  ;;  %v937_v40 = vadd.f32 %v936_v10, %v935_v61  ;;  %v1440_v58 = vpop.f32.mrf.mxu1  ;;  %v1466_v26 = vpop.f32.mrf.mxu0 }
 0x127   : > { %v1114_v60 = vsel %vm1113_vm2, %v1112_v20, %v1064_v31  ;;  %v964_v45 = vrot.slane %v890_v23, 4  ;;  %v952_v34 = vrot.slane %v888_v57, 4  ;;  %v867_v35 = vadd.f32 %v1462_v25, %v673_v7 }
 0x128   : > { %v1117_v37 = vsel %vm1116_vm3, %v1115_v11, %v1114_v60  ;;  %v1127_v38 = vrot.slane %v1070_v5, 2  ;;  %v1068_v39 = vmul.f32 %v1831_v0, %v933_v36  ;;  %v951_v44 = vadd.f32 %v950_v43, %v949_v2  ;;  %v680_v22 = vpop.f32.mrf.mxu1  ;;  %v812_v10 = vpop.f32.mrf.mxu0 }
 0x129   : > { %v1120_v48 = vsel %vm1119_vm4, %v1118_v51, %v1117_v37  ;;  %v938_v49 = vrot.slane %v937_v40, 1  ;;  %v965_v52 = vadd.f32 %v964_v45, %v890_v23  ;;  %v953_v53 = vadd.f32 %v952_v34, %v888_v57 }
 0x12a   : > { %v1121_v54 = vrot.slane %v1068_v39, 4  ;;  %v1071_v31 = vmul.f32 %v1834_v28, %v951_v44  ;;  %v891_v61 = vmul.f32 %v867_v35, %v1810_v32  ;;  %v665_v25 = vadd.f32 %v664_v33, %v1806_v29  ;;  %v1443_v20 = vpop.f32.mrf.mxu1  ;;  %v1469_v37 = vpop.f32.mrf.mxu0 }
 0x12b   : > { %v939_v11 = vadd.f32 %v938_v49, %v937_v40  ;;  %v966_v55 = vrot.slane %v965_v52, 2  ;;  %v954_v56 = vrot.slane %v953_v53, 2  ;;  %v686_v63 = vadd.f32 %v1439_v50, %v1768_v9 }
 0x12c   : > { %v1123_v3 = vsel %vm1122_vm5, %v1121_v54, %v1120_v48  ;;  %v1130_v1 = vrot.slane %v1071_v31, 1  ;;  %v970_v2 = vrot.slane %v891_v61, 4  ;;  %v865_v51 = vadd.f32 %v796_v46, %v665_v25  ;;  %v693_v39 = vpop.f32.mrf.mxu1  ;;  %v825_v25 = vpop.f32.mrf.mxu0 }
 0x12d   : > { %v1069_v23 = vmul.f32 %v1839_v14, %v939_v11  ;;  %v967_v57 = vadd.f32 %v966_v55, %v965_v52  ;;  %v955_v7 = vadd.f32 %v954_v56, %v953_v53  ;;  %v870_v5 = vadd.f32 %v1465_v16, %v686_v63 }
 0x12e   : > { %v971_v36 = vadd.f32 %v970_v2, %v891_v61  ;;  %v889_v29 = vmul.f32 %v865_v51, %v1810_v32  ;;  %v678_v33 = vadd.f32 %v677_v12, %v1770_v42  ;;  %v689_v43 = vadd.f32 %v1440_v58, %v1772_v47  ;;  %v1444_v11 = vpop.f32.mrf.mxu1 }
 0x12f   : > { %v1124_v9 = vrot.slane %v1069_v23, 3  ;;  %v968_v50 = vrot.slane %v967_v57, 1  ;;  %v956_v40 = vrot.slane %v955_v7, 1  ;;  %v894_v60 = vmul.f32 %v870_v5, %v1810_v32 }
 0x130   : > { %v972_v46 = vrot.slane %v971_v36, 2  ;;  %v958_v45 = vrot.slane %v889_v29, 4  ;;  %v868_v34 = vadd.f32 %v809_v18, %v678_v33  ;;  %v871_v35 = vadd.f32 %v1466_v26, %v689_v43  ;;  %v1470_v33 = vpop.f32.mrf.mxu0  ;;  %v696_v43 = vpop.f32.mrf.mxu1 }
 0x131   : > { %v1126_v16 = vsel %vm1125_vm6, %v1124_v9, %v1123_v3  ;;  %v969_v44 = vadd.f32 %v968_v50, %v967_v57  ;;  %v957_v48 = vadd.f32 %v956_v40, %v955_v7  ;;  %v988_v49 = vrot.slane %v894_v60, 4 }
 0x132   : > { %v1129_v42 = vsel %vm1128_vm7, %v1127_v38, %v1126_v16  ;;  %v973_v12 = vadd.f32 %v972_v46, %v971_v36  ;;  %v959_v47 = vadd.f32 %v958_v45, %v889_v29  ;;  %v892_v58 = vmul.f32 %v868_v34, %v1810_v32 }
 0x133   : > { %v1132_v52 = vsel %vm1131_vm8, %v1130_v1, %v1129_v42  ;;  %v1074_v53 = vmul.f32 %v1817_v62, %v969_v44  ;;  %v1072_v18 = vmul.f32 %v957_v48, %v1812_v41  ;;  %v989_v26 = vadd.f32 %v988_v49, %v894_v60  ;;  %v828_v48 = vpop.f32.mrf.mxu0  ;;  %v1447_v49 = vpop.f32.mrf.mxu1 }
 0x134   : > { %v974_v54 = vrot.slane %v973_v12, 1  ;;  %v960_v31 = vrot.slane %v959_v47, 2  ;;  %v976_v61 = vrot.slane %v892_v58, 4  ;;  %v895_v56 = vmul.f32 %v871_v35, %v1810_v32 }
 0x135   : > { %v990_v55 = vrot.slane %v989_v26, 2  ;;  %v681_v38 = vadd.f32 %v680_v22, %v1774_v6  ;;  %v1164_v63 = vrot.slane %v1132_v52, 4  ;;  %v702_v7 = vadd.f32 %v1443_v20, %v1776_v13 }
 0x136   : > { %v975_v3 = vadd.f32 %v974_v54, %v973_v12  ;;  %v961_v2 = vadd.f32 %v960_v31, %v959_v47  ;;  %v977_v51 = vadd.f32 %v976_v61, %v892_v58  ;;  %v994_v23 = vrot.slane %v895_v56, 4 }
 0x137   : > { %v991_v1 = vadd.f32 %v990_v55, %v989_v26  ;;  %v869_v57 = vadd.f32 %v812_v10, %v681_v38  ;;  %v874_v6 = vadd.f32 %v1469_v37, %v702_v7  ;;  %v1880_v22 = vadd.f32 %v1164_v63, %v1132_v52  ;;  %v1473_v63 = vpop.f32.mrf.mxu0 }
 0x138   : > { %v1075_v5 = vmul.f32 %v1821_v59, %v975_v3  ;;  %v962_v36 = vrot.slane %v961_v2, 1  ;;  %v978_v29 = vrot.slane %v977_v51, 2  ;;  %v995_v50 = vadd.f32 %v994_v23, %v895_v56  ;;  %v709_v3 = vpop.f32.mrf.mxu1 }
 0x139   : > { %v992_v9 = vrot.slane %v991_v1, 1  ;;  %v893_v40 = vmul.f32 %v869_v57, %v1810_v32  ;;  %v898_v13 = vmul.f32 %v874_v6, %v1810_v32  ;;  %v1135_v20 = vrot.slane %v1074_v53, 6  ;;  %v841_v6 = vpop.f32.mrf.mxu0 }
 0x13a   : > { %v963_v60 = vadd.f32 %v962_v36, %v961_v2  ;;  %v979_v46 = vadd.f32 %v978_v29, %v977_v51  ;;  %v996_v34 = vrot.slane %v995_v50, 2  ;;  %v694_v44 = vadd.f32 %v693_v39, %v1778_v15 }
 0x13b   : > { %v993_v45 = vadd.f32 %v992_v9, %v991_v1  ;;  %v982_v10 = vrot.slane %v893_v40, 4  ;;  %v1012_v47 = vrot.slane %v898_v13, 4  ;;  %v1166_v58 = vrot.slane %v1880_v22, 2 }
 0x13c   : > { %v1073_v35 = vmul.f32 %v1824_v4, %v963_v60  ;;  %v980_v16 = vrot.slane %v979_v46, 1  ;;  %v997_v37 = vadd.f32 %v996_v34, %v995_v50  ;;  %v872_v54 = vadd.f32 %v825_v25, %v694_v44  ;;  %v1448_v60 = vpop.f32.mrf.mxu1 }
 0x13d   : > { %v1886_v42 = vmul.f32 %v1827_v8, %v993_v45  ;;  %v983_v12 = vadd.f32 %v982_v10, %v893_v40  ;;  %v1137_v31 = vrot.slane %v1075_v5, 5  ;;  %v1013_v55 = vadd.f32 %v1012_v47, %v898_v13 }
 0x13e   : > { %v1133_v52 = vrot.slane %v1073_v35, 7  ;;  %v981_v26 = vadd.f32 %v980_v16, %v979_v46  ;;  %v998_v53 = vrot.slane %v997_v37, 1  ;;  %v896_v39 = vmul.f32 %v872_v54, %v1810_v32 }
 0x13f   : > { %v984_v61 = vrot.slane %v983_v12, 2  ;;  %v705_v38 = vadd.f32 %v1444_v11, %v1782_v17  ;;  %v1014_v23 = vrot.slane %v1013_v55, 2  ;;  %v697_v9 = vadd.f32 %v696_v43, %v1786_v19 }
 0x140   : > { %v1134_v56 = vsel %vm1113_vm2, %v1133_v52, %v1072_v18  ;;  %v1076_v15 = vmul.f32 %v1831_v0, %v981_v26  ;;  %v999_v51 = vadd.f32 %v998_v53, %v997_v37  ;;  %v1000_v7 = vrot.slane %v896_v39, 4 }
 0x141   : > { %v1136_v2 = vsel %vm1116_vm3, %v1135_v20, %v1134_v56  ;;  %v985_v1 = vadd.f32 %v984_v61, %v983_v12  ;;  %v875_v5 = vadd.f32 %v1470_v33, %v705_v38  ;;  %v1015_v29 = vadd.f32 %v1014_v23, %v1013_v55  ;;  %v1474_v12 = vpop.f32.mrf.mxu0 }
 0x142   : > { %v1138_v25 = vsel %vm1119_vm4, %v1137_v31, %v1136_v2  ;;  %v1139_v57 = vrot.slane %v1076_v15, 4  ;;  %v1079_v18 = vmul.f32 %v1834_v28, %v999_v51  ;;  %v1001_v11 = vadd.f32 %v1000_v7, %v896_v39 }
 0x143   : > { %v986_v36 = vrot.slane %v985_v1, 1  ;;  %v899_v50 = vmul.f32 %v875_v5, %v1810_v32  ;;  %v718_v40 = vadd.f32 %v1447_v49, %v1790_v21  ;;  %v1143_v46 = vrot.slane %v1886_v42, 2 }
 0x144   : > { %v1140_v17 = vsel %vm1122_vm5, %v1139_v57, %v1138_v25  ;;  %v1016_v34 = vrot.slane %v1015_v29, 1  ;;  %v873_v33 = vadd.f32 %v828_v48, %v697_v9  ;;  %v1002_v10 = vrot.slane %v1001_v11, 2 }
 0x145   : > { %v987_v45 = vadd.f32 %v986_v36, %v985_v1  ;;  %v1018_v13 = vrot.slane %v899_v50, 4  ;;  %v878_v20 = vadd.f32 %v1473_v63, %v718_v40  ;;  %v710_v35 = vadd.f32 %v709_v3, %v1797_v24 }
 0x146   : > { %v1017_v43 = vadd.f32 %v1016_v34, %v1015_v29  ;;  %v897_v16 = vmul.f32 %v873_v33, %v1810_v32  ;;  %v721_v44 = vadd.f32 %v1448_v60, %v1804_v27  ;;  %v1003_v21 = vadd.f32 %v1002_v10, %v1001_v11 }
 0x147   : > { %v1077_v19 = vmul.f32 %v1839_v14, %v987_v45  ;;  %v1019_v49 = vadd.f32 %v1018_v13, %v899_v50  ;;  %v902_v37 = vmul.f32 %v878_v20, %v1810_v32  ;;  %v876_v42 = vadd.f32 %v841_v6, %v710_v35  ;;  %v844_v50 = vpop.f32.mrf.mxu0 }
 0x148   : > { %v1907_v48 = vmul.f32 %v1817_v62, %v1017_v43  ;;  %v1006_v52 = vrot.slane %v897_v16, 4  ;;  %v879_v26 = vadd.f32 %v1474_v12, %v721_v44  ;;  %v1004_v24 = vrot.slane %v1003_v21, 1  ;;  %v712_v62 = vpop.f32.mrf.mxu1 }
 0x149   : > { %v1141_v47 = vrot.slane %v1077_v19, 3  ;;  %v1020_v54 = vrot.slane %v1019_v49, 2  ;;  %v1036_v31 = vrot.slane %v902_v37, 4  ;;  %v900_v53 = vmul.f32 %v876_v42, %v1810_v32 }
 0x14a   : > { %v1145_v61 = vrot.slane %v1079_v18, 1  ;;  %v1007_v55 = vadd.f32 %v1006_v52, %v897_v16  ;;  %v903_v56 = vmul.f32 %v879_v26, %v1810_v32  ;;  %v1005_v39 = vadd.f32 %v1004_v24, %v1003_v21 }
 0x14b   : > { %v1142_v27 = vsel %vm1125_vm6, %v1141_v47, %v1140_v17  ;;  %v1021_v38 = vadd.f32 %v1020_v54, %v1019_v49  ;;  %v1037_v63 = vadd.f32 %v1036_v31, %v902_v37  ;;  %v1024_v51 = vrot.slane %v900_v53, 4 }
 0x14c   : > { %v1144_v15 = vsel %vm1128_vm7, %v1143_v46, %v1142_v27  ;;  %v1008_v2 = vrot.slane %v1007_v55, 2  ;;  %v1042_v1 = vrot.slane %v903_v56, 4  ;;  %v1080_v25 = vmul.f32 %v1005_v39, %v1812_v41 }
 0x14d   : > { %v1146_v3 = vsel %vm1131_vm8, %v1145_v61, %v1144_v15  ;;  %v1022_v57 = vrot.slane %v1021_v38, 1  ;;  %v1038_v7 = vrot.slane %v1037_v63, 2  ;;  %v1025_v18 = vadd.f32 %v1024_v51, %v900_v53 }
 0x14e   : > { %v1170_v23 = vrot.slane %v1146_v3, 4  ;;  %v1009_v5 = vadd.f32 %v1008_v2, %v1007_v55  ;;  %v1043_v36 = vadd.f32 %v1042_v1, %v903_v56  ;;  %v713_v29 = vadd.f32 %v712_v62, %v1808_v30 }
 0x14f   : > { %v1023_v17 = vadd.f32 %v1022_v57, %v1021_v38  ;;  %v1039_v11 = vadd.f32 %v1038_v7, %v1037_v63  ;;  %v1026_v6 = vrot.slane %v1025_v18, 2  ;;  %v1167_v45 = vadd.f32 %v1166_v58, %v1880_v22 }
 0x150   : > { %v1171_v9 = vadd.f32 %v1170_v23, %v1146_v3  ;;  %v1010_v40 = vrot.slane %v1009_v5, 1  ;;  %v1044_v60 = vrot.slane %v1043_v36, 2  ;;  %v877_v46 = vadd.f32 %v844_v50, %v713_v29 }
 0x151   : > { %v1083_v34 = vmul.f32 %v1821_v59, %v1023_v17  ;;  %v1040_v33 = vrot.slane %v1039_v11, 1  ;;  %v1027_v13 = vadd.f32 %v1026_v6, %v1025_v18  ;;  %v1168_v49 = vrot.slane %v1167_v45, 1  ;;  %v1522_v18 = vld [vmem:[%s1624_s28] sm:$0x7] }
 0x152   : > { %v1172_v41 = vrot.slane %v1171_v9, 2  ;;  %v1011_v10 = vadd.f32 %v1010_v40, %v1009_v5  ;;  %v1045_v20 = vadd.f32 %v1044_v60, %v1043_v36  ;;  %v901_v30 = vmul.f32 %v877_v46, %v1810_v32 }
 0x153   : > { %v1041_v19 = vadd.f32 %v1040_v33, %v1039_v11  ;;  %v1028_v16 = vrot.slane %v1027_v13, 1  ;;  %v1149_v52 = vrot.slane %v1907_v48, 6  ;;  %v1151_v26 = vrot.slane %v1083_v34, 5 }
 0x154   : > { %v1173_v35 = vadd.f32 %v1172_v41, %v1171_v9  ;;  %v1081_v43 = vmul.f32 %v1824_v4, %v1011_v10  ;;  %v1046_v44 = vrot.slane %v1045_v20, 1  ;;  %v1030_v21 = vrot.slane %v901_v30, 4 }
 0x155   : > { %v1086_v22 = vmul.f32 %v1827_v8, %v1041_v19  ;;  %v1029_v42 = vadd.f32 %v1028_v16, %v1027_v13  ;;  %v1169_v31 = vadd.f32 %v1168_v49, %v1167_v45 }
 0x156   : > { %v1174_v37 = vrot.slane %v1173_v35, 1  ;;  %v1147_v58 = vrot.slane %v1081_v43, 7  ;;  %v1047_v59 = vadd.f32 %v1046_v44, %v1045_v20  ;;  %v1031_v12 = vadd.f32 %v1030_v21, %v901_v30 }
 0x157   : > { %v1084_v24 = vmul.f32 %v1831_v0, %v1029_v42  ;;  %v1157_v38 = vrot.slane %v1086_v22, 2 }
 0x158   : > { %v1175_v47 = vadd.f32 %v1174_v37, %v1173_v35  ;;  %v1148_v32 = vsel %vm1113_vm2, %v1147_v58, %v1080_v25  ;;  %v1087_v4 = vmul.f32 %v1834_v28, %v1047_v59  ;;  %v1032_v54 = vrot.slane %v1031_v12, 2 }
 0x159   : > { %v1150_v61 = vsel %vm1116_vm3, %v1149_v52, %v1148_v32  ;;  %v1153_v27 = vrot.slane %v1084_v24, 4 }
 0x15a   : > { %v1185_v53 = vrot.slane %v1175_v47, 7  ;;  %v1152_v8 = vsel %vm1119_vm4, %v1151_v26, %v1150_v61  ;;  %v1033_v55 = vadd.f32 %v1032_v54, %v1031_v12  ;;  %v1159_v63 = vrot.slane %v1087_v4, 1 }
 0x15b   : > { %v1154_v48 = vsel %vm1122_vm5, %v1153_v27, %v1152_v8 }
 0x15c   : > { %v1186_v56 = vsel %vm1113_vm2, %v1185_v53, %v1169_v31  ;;  %v1034_v15 = vrot.slane %v1033_v55, 1 }
 0x15e   : > { %v1035_v39 = vadd.f32 %v1034_v15, %v1033_v55 }
 0x160   : > { %v1085_v0 = vmul.f32 %v1839_v14, %v1035_v39 }
 0x162   : > { %v1155_v28 = vrot.slane %v1085_v0, 3 }
 0x164   : > { %v1156_v62 = vsel %vm1125_vm6, %v1155_v28, %v1154_v48 }
 0x165   : > { %v1158_v3 = vsel %vm1128_vm7, %v1157_v38, %v1156_v62 }
 0x166   : > { %v1160_v2 = vsel %vm1131_vm8, %v1159_v63, %v1158_v3 }
 0x167   : > { %v1176_v51 = vrot.slane %v1160_v2, 4 }
 0x169   : > { %v1177_v1 = vadd.f32 %v1176_v51, %v1160_v2 }
 0x16b   : > { %v1178_v23 = vrot.slane %v1177_v1, 2 }
 0x16d   : > { %v1179_v25 = vadd.f32 %v1178_v23, %v1177_v1 }
 0x16f   : > { %v1180_v57 = vrot.slane %v1179_v25, 1 }
 0x171   : > { %v1181_v7 = vadd.f32 %v1180_v57, %v1179_v25 }
 0x173   : > { %v1187_v5 = vrot.slane %v1181_v7, 6 }
 0x175   : > { %v1188_v14 = vsel %vm1116_vm3, %v1187_v5, %v1186_v56 }
 0x176   : > { %v1190_v36 = vadd.f32 %v1522_v18, %v1188_v14 }
 0x178   : > { %1191 = vst [vmem:[%s252_s7] sm:$0x7] %v1190_v36 }
 0x179 PF: > { %s13_s16 = sadd.s32 1, %s1561_s16   ;;  %s1960_s12 = smov %s1553_s14 }
 0x17a   : > { %p10_p7 = scmp.ge.s32.totalorder %s13_s16, 10   ;;  %s1961_s13 = smov %s1557_s15 }
 0x17b   : > { %s1962_s14 = smov %s1965_s17  ;;  %s1963_s15 = smov %s1969_s18 }
 0x17c   :  { %12 = sbr.rel (!%p10_p7) target bundleno = 3 (0x3), region = 68 }

</bundles_post_ra>
